<compile_context>
chip_gen: v7x
topology: tpu7x:2x2x1
jax: 0.10.0
libtpu: 0.0.40
codegen_flags: <defaults>
</compile_context>

<pallas_src>
import math

import numpy as np
import jax
import jax.numpy as jnp
from jax.experimental import pallas as pl
from jax.experimental.pallas import tpu as pltpu


# ----------------------------------------------------------------------------
# Host-side helpers
# ----------------------------------------------------------------------------
def _bilinear_matrix(out_size: int, in_size: int, align_corners: bool = True) -> np.ndarray:
    """Interpolation matrix W (out_size, in_size); out = W @ in (1-D case)."""
    w = np.zeros((out_size, in_size), dtype=np.float32)
    if in_size == 1:
        w[:, 0] = 1.0
        return w
    for i in range(out_size):
        if align_corners:
            src = 0.0 if out_size == 1 else i * (in_size - 1) / (out_size - 1)
        else:
            src = max((i + 0.5) * in_size / out_size - 0.5, 0.0)
        i0 = min(int(np.floor(src)), in_size - 1)
        i1 = min(i0 + 1, in_size - 1)
        frac = src - i0
        w[i, i0] += 1.0 - frac
        w[i, i1] += frac
    return w


def _lcm(a: int, b: int) -> int:
    return a * b // math.gcd(a, b)


def _round_up(x: int, m: int) -> int:
    return -(-x // m) * m


def _choose_tile_b(B, h_in, w_in, h_out, w_out, in_item, out_item, w_item,
                   height_first):
    """Pick how many (n*c) image slabs to process per grid step (separable path)."""
    # Granularity so the sublane (second-minor) dims of the x / out blocks are
    # multiples of 8 (last dims always equal the full array width).
    g = _lcm(8 // math.gcd(8, h_in), 8 // math.gcd(8, h_out))

    # Columns seen by the block-diagonal (batched height) matmul and the size
    # of the f32 intermediate depend on which pass runs first.
    blk_cols = w_in if height_first else w_out
    tmp_elems_per_img = (h_out * w_in) if height_first else (h_in * w_out)

    def vmem_bytes(tb):
        blocks = 2 * tb * (h_in * w_in * in_item + h_out * w_out * out_item)
        weights = 2 * ((tb * h_out) * (tb * h_in) + w_in * w_out) * w_item
        tmp = tb * tmp_elems_per_img * 4  # f32 intermediate
        return blocks + weights + tmp

    # Keep the block-diagonal matmul's redundant MACs roughly under the HBM
    # roofline (conservative, v5e-safe budget) so MXU stays off the critical
    # path of this memory-bound op.
    bytes_per_img = h_in * w_in * in_item + h_out * w_out * out_item
    blkdiag_macs_per_img_per_tb = max(1, h_out * h_in * blk_cols)
    macs_per_byte_budget = 100 if w_item == 2 else 25
    compute_cap = max(g, int(bytes_per_img * macs_per_byte_budget
                             // blkdiag_macs_per_img_per_tb))

    budget = 26 * 1024 * 1024  # conservative: fits v7x (64 MiB VMEM) easily
    max_tb = g
    tb = g
    while tb <= max(B, g):
        if tb > g and (vmem_bytes(tb) > budget or tb > compute_cap):
            break
        if tb > g and B >= 2 * g and -(-B // tb) < 2:  # keep >= 2 grid steps
            break
        max_tb = tb
        tb += g

    # Prefer a tile that divides B exactly (no batch padding).
    for cand in range(max_tb, g - 1, -g):
        if B % cand == 0:
            return cand
    return max_tb


# ----------------------------------------------------------------------------
# Kernels
# ----------------------------------------------------------------------------
def _make_separable_kernel(height_first: bool):
    def kernel(wh_blk_ref, ww_t_ref, x_ref, o_ref):
        # wh_blk_ref: (TB*H_out, TB*H_in) block-diagonal height weights (resident)
        # ww_t_ref  : (W_in, W_out)       pre-transposed width weights  (resident)
        # x_ref     : (TB*H_in, W_in)     TB input slabs, natural layout
        # o_ref     : (TB*H_out, W_out)   TB output slabs, natural layout
        if height_first:
            tmp = jnp.dot(wh_blk_ref[...], x_ref[...],
                          preferred_element_type=jnp.float32)     # (TB*H_out, W_in)
            out = jnp.dot(tmp.astype(ww_t_ref.dtype), ww_t_ref[...],
                          preferred_element_type=jnp.float32)     # (TB*H_out, W_out)
        else:
            tmp = jnp.dot(x_ref[...], ww_t_ref[...],
                          preferred_element_type=jnp.float32)     # (TB*H_in, W_out)
            out = jnp.dot(wh_blk_ref[...], tmp.astype(wh_blk_ref.dtype),
                          preferred_element_type=jnp.float32)     # (TB*H_out, W_out)
        o_ref[...] = out.astype(o_ref.dtype)

    return kernel


def _fused_kernel(w_ref, x_ref, o_ref):
    # w_ref: (H_in*W_in, H_out*W_out)  kron(Wh, Ww)^T (resident, lane-dense)
    # x_ref: (TBR, H_in*W_in)          flattened images
    # o_ref: (TBR, H_out*W_out)        flattened outputs (lane-dense stores)
    o_ref[...] = jnp.dot(x_ref[...], w_ref[...],
                         preferred_element_type=jnp.float32).astype(o_ref.dtype)


# ----------------------------------------------------------------------------
# Path implementations
# ----------------------------------------------------------------------------
def _interpolate_separable(x, wh, ww, compute_dtype):
    n, c, h_in, w_in = x.shape
    h_out, w_out = wh.shape[0], ww.shape[0]
    B = n * c
    in_item = np.dtype(compute_dtype).itemsize
    out_item = np.dtype(x.dtype).itemsize
    w_item = in_item

    # Choose which matmul runs first to minimise the block-diagonal pass' cost
    # (evaluated at a nominal TB=8: height-first wins for upsampled width,
    # width-first for downsampled width).
    def order_macs(hf, tb=8):
        if hf:
            return tb * tb * h_out * h_in * w_in + tb * h_out * w_in * w_out
        return tb * h_in * w_in * w_out + tb * tb * h_in * h_out * w_out

    height_first = order_macs(True) <= order_macs(False)

    tb = _choose_tile_b(B, h_in, w_in, h_out, w_out,
                        in_item, out_item, w_item, height_first)
    n_blocks = -(-B // tb)
    b_pad = n_blocks * tb

    wh_blk = jnp.asarray(np.kron(np.eye(tb, dtype=np.float32), wh),
                         dtype=compute_dtype)                       # (TB*H_out, TB*H_in)
    ww_t = jnp.asarray(np.ascontiguousarray(ww.T), dtype=compute_dtype)  # (W_in, W_out)

    # Natural 2-D view: rows are (batch, row) pairs — no HBM transpose needed.
    x2 = x.reshape(B * h_in, w_in).astype(compute_dtype)
    if b_pad != B:
        x2 = jnp.pad(x2, ((0, (b_pad - B) * h_in), (0, 0)))

    out2 = pl.pallas_call(
        _make_separable_kernel(height_first),
        out_shape=jax.ShapeDtypeStruct((b_pad * h_out, w_out), x.dtype),
        grid_spec=pltpu.PrefetchScalarGridSpec(
            num_scalar_prefetch=0,
            grid=(n_blocks,),
            in_specs=[
                pl.BlockSpec((tb * h_out, tb * h_in), lambda i: (0, 0)),  # Wh blk
                pl.BlockSpec((w_in, w_out), lambda i: (0, 0)),            # Ww^T
                pl.BlockSpec((tb * h_in, w_in), lambda i: (i, 0)),        # x slabs
            ],
            out_specs=pl.BlockSpec((tb * h_out, w_out), lambda i: (i, 0)),
        ),
        compiler_params=pltpu.CompilerParams(
            dimension_semantics=("parallel",),
            vmem_limit_bytes=40 * 1024 * 1024),
    )(wh_blk, ww_t, x2)

    return out2[: B * h_out].reshape(n, c, h_out, w_out)


def _interpolate_fused(x, wh, ww, compute_dtype):
    n, c, h_in, w_in = x.shape
    h_out, w_out = wh.shape[0], ww.shape[0]
    B = n * c
    k_in, k_out = h_in * w_in, h_out * w_out
    in_item = np.dtype(compute_dtype).itemsize
    out_item = np.dtype(x.dtype).itemsize

    # rvec(Wh @ X @ Ww^T) = (Wh ⊗ Ww) rvec(X)  =>  out_flat = x_flat @ kron(Wh, Ww)^T
    w_full_t = jnp.asarray(np.ascontiguousarray(np.kron(wh, ww).T),
                           dtype=compute_dtype)                     # (k_in, k_out)

    budget = 26 * 1024 * 1024
    avail = budget - 2 * k_in * k_out * in_item
    per_row = 2 * (k_in * in_item + k_out * out_item)
    max_rows = max(8, (avail // per_row) // 8 * 8) if avail > 0 else 8
    tbr = int(min(512, max_rows, _round_up(B, 8)))
    if B >= 16:
        tbr = min(tbr, max(8, _round_up(-(-B // 2), 8)))  # >= 2 grid steps (megacore)
    tbr = max(8, (tbr // 8) * 8)

    n_blocks = -(-B // tbr)
    b_pad = n_blocks * tbr

    x2 = x.reshape(B, k_in).astype(compute_dtype)
    if b_pad != B:
        x2 = jnp.pad(x2, ((0, b_pad - B), (0, 0)))

    out2 = pl.pallas_call(
        _fused_kernel,
        out_shape=jax.ShapeDtypeStruct((b_pad, k_out), x.dtype),
        grid_spec=pltpu.PrefetchScalarGridSpec(
            num_scalar_prefetch=0,
            grid=(n_blocks,),
            in_specs=[
                pl.BlockSpec((k_in, k_out), lambda i: (0, 0)),   # kron(Wh,Ww)^T, resident
                pl.BlockSpec((tbr, k_in), lambda i: (i, 0)),     # flattened images
            ],
            out_specs=pl.BlockSpec((tbr, k_out), lambda i: (i, 0)),
        ),
        compiler_params=pltpu.CompilerParams(
            dimension_semantics=("parallel",),
            vmem_limit_bytes=40 * 1024 * 1024),
    )(w_full_t, x2)

    return out2[:B].reshape(n, c, h_out, w_out)


# ----------------------------------------------------------------------------
# Public wrapper
# ----------------------------------------------------------------------------
def interpolate_bilinear(x, size=None, scale_factor=None, align_corners=True,
                         compute_dtype=None, path="auto"):
    """Bilinear resize of an NCHW array via a single Pallas TPU kernel.

    path: 'auto' (default), 'separable', or 'fused'.
    """
    assert size is not None or scale_factor is not None
    n, c, h_in, w_in = x.shape
    if size is not None:
        h_out, w_out = (size, size) if isinstance(size, int) else tuple(size)
        h_out, w_out = int(h_out), int(w_out)
    else:
        if isinstance(scale_factor, (tuple, list)):
            sf_h, sf_w = scale_factor
        else:
            sf_h = sf_w = scale_factor
        h_out = int(math.floor(h_in * sf_h))
        w_out = int(math.floor(w_in * sf_w))

    if compute_dtype is None:
        compute_dtype = jnp.bfloat16 if x.dtype == jnp.bfloat16 else jnp.float32
    compute_dtype = np.dtype(compute_dtype)

    in_item = compute_dtype.itemsize
    out_item = np.dtype(x.dtype).itemsize

    wh = _bilinear_matrix(h_out, h_in, align_corners)   # (H_out, H_in)
    ww = _bilinear_matrix(w_out, w_in, align_corners)   # (W_out, W_in)

    # Fused (single lane-dense matmul) vs separable (two-pass) selection.
    k_in, k_out = h_in * w_in, h_out * w_out
    fused_w_bytes = k_in * k_out * in_item
    fused_macs_per_byte = (k_in * k_out) / max(1, k_in * in_item + k_out * out_item)
    macs_per_byte_budget = 80.0 if in_item == 2 else 14.0   # conservative (v5e f32)
    lane_poor = (w_in < 128) or (w_out < 128)
    if path == "fused":
        use_fused = True
    elif path == "separable":
        use_fused = False
    else:
        use_fused = (fused_w_bytes <= 4 * 1024 * 1024
                     and fused_macs_per_byte <= macs_per_byte_budget
                     and lane_poor)

    if use_fused:
        return _interpolate_fused(x, wh, ww, compute_dtype)
    return _interpolate_separable(x, wh, ww, compute_dtype)


class Interpolate:
    """Drop-in analogue of the PyTorch Interpolate module (bilinear only)."""

    def __init__(self, size=None, scale_factor=None, mode='bilinear',
                 align_corners=True):
        assert mode == 'bilinear', "only mode='bilinear' is implemented"
        self.size = size
        self.scale_factor = scale_factor
        self.align_corners = align_corners

    def __call__(self, x):
        return interpolate_bilinear(x, size=self.size,
                                    scale_factor=self.scale_factor,
                                    align_corners=self.align_corners)


# ----------------------------------------------------------------------------
# Reference + self-test
# ----------------------------------------------------------------------------
def _ref_bilinear(x_np, h_out, w_out):
    """Per-pixel numpy reference: F.interpolate bilinear, align_corners=True."""
    n, c, h_in, w_in = x_np.shape
    out = np.zeros((n, c, h_out, w_out), dtype=np.float32)
    sh = (h_in - 1) / (h_out - 1) if h_out > 1 else 0.0
    sw = (w_in - 1) / (w_out - 1) if w_out > 1 else 0.0
    for oy in range(h_out):
        sy = oy * sh
        y0 = min(int(np.floor(sy)), h_in - 1)
        y1 = min(y0 + 1, h_in - 1)
        fy = sy - y0
        for ox in range(w_out):
            sx = ox * sw
            x0 = min(int(np.floor(sx)), w_in - 1)
            x1 = min(x0 + 1, w_in - 1)
            fx = sx - x0
            out[:, :, oy, ox] = (
                x_np[:, :, y0, x0] * (1 - fy) * (1 - fx)
                + x_np[:, :, y0, x1] * (1 - fy) * fx
                + x_np[:, :, y1, x0] * fy * (1 - fx)
                + x_np[:, :, y1, x1] * fy * fx
            )
    return out


if __name__ == "__main__":
    key = jax.random.PRNGKey(0)
    x = jax.random.normal(key, (2, 4, 16, 16), dtype=jnp.float32)
    x_np = np.asarray(x)
    ref_up = _ref_bilinear(x_np, 32, 32)

    # 1) Module-style usage (scale_factor path, auto -> separable, height-first).
    up = Interpolate(scale_factor=2)
    out = jax.block_until_ready(up(x))
    assert out.shape == (2, 4, 32, 32), out.shape
    np.testing.assert_allclose(np.asarray(out), ref_up, rtol=1e-5, atol=1e-5)

    # 2) Explicit non-square size (auto -> separable, exercises padding-free tb).
    out2 = jax.block_until_ready(interpolate_bilinear(x, size=(24, 40)))
    np.testing.assert_allclose(np.asarray(out2), _ref_bilinear(x_np, 24, 40),
                               rtol=1e-5, atol=1e-5)

    # 3) Downsampling, separable width-first branch.
    out3 = jax.block_until_ready(interpolate_bilinear(x, size=(8, 8),
                                                      path="separable"))
    np.testing.assert_allclose(np.asarray(out3), _ref_bilinear(x_np, 8, 8),
                               rtol=1e-5, atol=1e-5)

    # 4) Fused lane-dense single-matmul path, f32 (forced).
    out4 = jax.block_until_ready(interpolate_bilinear(x, scale_factor=2,
                                                      path="fused"))
    np.testing.assert_allclose(np.asarray(out4), ref_up, rtol=1e-5, atol=1e-5)

    # 5) bf16 compute path (auto -> fused with bf16 weights), looser tolerance.
    out5 = jax.block_until_ready(
        interpolate_bilinear(x, scale_factor=2, compute_dtype=jnp.bfloat16))
    np.testing.assert_allclose(np.asarray(out5), ref_up, rtol=5e-2, atol=5e-2)

    print("KERNEL_OK")
</pallas_src>

<mosaic_0001>
module attributes {stable_mosaic.version = 11 : i64} {
  func.func @kernel(%arg0: i32, %arg1: memref<128x64xf32, #tpu.memory_space<vmem>>, %arg2: memref<16x32xf32, #tpu.memory_space<vmem>>, %arg3: memref<64x16xf32, #tpu.memory_space<vmem>>, %arg4: memref<128x32xf32, #tpu.memory_space<vmem>>) attributes {dimension_semantics = [#tpu.dimension_semantics<parallel>], iteration_bounds = array<i64: 2>, scalar_prefetch = 0 : i64, scratch_operands = 0 : i64, tpu.core_type = #tpu.core_type<tc>, window_params = [{pipeline_mode = #tpu.pipeline_mode<synchronous>, transform_indices = @transform_0, window_bounds = array<i64: 128, 64>}, {pipeline_mode = #tpu.pipeline_mode<synchronous>, transform_indices = @transform_1, window_bounds = array<i64: 16, 32>}, {transform_indices = @transform_2, window_bounds = array<i64: 64, 16>}, {transform_indices = @transform_3, window_bounds = array<i64: 128, 32>}]} {
    %c0 = arith.constant 0 : index
    %c0_0 = arith.constant 0 : index
    %0 = vector.load %arg1[%c0, %c0_0] : memref<128x64xf32, #tpu.memory_space<vmem>>, vector<128x64xf32>
    %c0_1 = arith.constant 0 : index
    %c0_2 = arith.constant 0 : index
    %1 = vector.load %arg3[%c0_1, %c0_2] : memref<64x16xf32, #tpu.memory_space<vmem>>, vector<64x16xf32>
    %cst = arith.constant dense<0.000000e+00> : vector<128x16xf32>
    %2 = tpu.matmul %0, %1, %cst {dimension_numbers = #tpu.dot_dimension_numbers<[1], [0], [0], [1], [0, 0, 1, 1], [], []>} : vector<128x64xf32>, vector<64x16xf32>, vector<128x16xf32> -> vector<128x16xf32>
    %c0_3 = arith.constant 0 : index
    %c0_4 = arith.constant 0 : index
    %3 = vector.load %arg2[%c0_3, %c0_4] : memref<16x32xf32, #tpu.memory_space<vmem>>, vector<16x32xf32>
    %cst_5 = arith.constant dense<0.000000e+00> : vector<128x32xf32>
    %4 = tpu.matmul %2, %3, %cst_5 {dimension_numbers = #tpu.dot_dimension_numbers<[1], [0], [0], [1], [0, 0, 1, 1], [], []>} : vector<128x16xf32>, vector<16x32xf32>, vector<128x32xf32> -> vector<128x32xf32>
    %c0_6 = arith.constant 0 : index
    %c0_7 = arith.constant 0 : index
    %5 = vector.load %arg4[%c0_6, %c0_7] : memref<128x32xf32, #tpu.memory_space<vmem>>, vector<128x32xf32>
    tpu.vector_store %arg4[%c0_6, %c0_7], %4 {strides = array<i32>} : memref<128x32xf32, #tpu.memory_space<vmem>>, vector<128x32xf32>,
    return
  }
  func.func @transform_0(%arg0: i32) -> (i32, i32) {
    %c0_i32 = arith.constant 0 : i32
    %c0_i32_0 = arith.constant 0 : i32
    %c0_i32_1 = arith.constant 0 : i32
    return %c0_i32, %c0_i32_0 : i32, i32
  }
  func.func @transform_1(%arg0: i32) -> (i32, i32) {
    %c0_i32 = arith.constant 0 : i32
    %c0_i32_0 = arith.constant 0 : i32
    %c0_i32_1 = arith.constant 0 : i32
    return %c0_i32, %c0_i32_0 : i32, i32
  }
  func.func @transform_2(%arg0: i32) -> (i32, i32) {
    %c0_i32 = arith.constant 0 : i32
    %c0_i32_0 = arith.constant 0 : i32
    return %arg0, %c0_i32 : i32, i32
  }
  func.func @transform_3(%arg0: i32) -> (i32, i32) {
    %c0_i32 = arith.constant 0 : i32
    %c0_i32_0 = arith.constant 0 : i32
    return %arg0, %c0_i32 : i32, i32
  }
}

</mosaic_0001>

<bundles_post_ra>
// kernel: tpu_custom_call.1
= control target key start
LH: loop header
LB: loop body
LE: loop exit
PB: predicated region body
PF: predicated region fallthrough
CT: control target
= control target key end

     0   :  { %s870_s12 = smov 0   ;;  %s1011_s0 = inlined_call_operand.vmem [shape: f32[128,64], index: 0, kind: input, shape index: {}]   ;;  %s1012_s1 = inlined_call_operand.vmem [shape: f32[16,32], index: 1, kind: input, shape index: {}]   ;;  %s1013_s2 = inlined_call_operand.vmem [shape: f32[128,16], index: 2, kind: input, shape index: {}]   ;;  %s1014_s3 = inlined_call_operand.vmem [shape: f32[256,32], index: 3, kind: output, shape index: {}]  }
   0x1 LB: > { %s661_s13 = sadd.s32 4294967295, %s848_s12   ;;  %p665_p0 = scmp.ge.s32.totalorder %s848_s12, 1  ;;  %s848_s12 = sphi %s870_s12, %s13_s12  }
   0x2   : > { %p138_p1 = scmp.lt.s32.totalorder %s848_s12, 3 }
   0x4   : > { %p139_p2 = pnand %p665_p0, %p138_p1 }
   0x5   : > { %s666_s14 = sshll.u32 (!%p139_p2), %s661_s13, 3  ;;  %v174_v0 = vld [vmem:[%s1011_s0] sm:$0xff] (!%p139_p2)  ;;  %vm198_vm0 = vcmask (!%p139_p2), 523264   ;;  %v393_v2 = vld [vmem:[%s1012_s1 + $0x8] sm:$0xff] (!%p139_p2)  ;;  %v176_v17 = vld [vmem:[%s1011_s0 + $0x10] sm:$0xff] (!%p139_p2)  ;;  %vm394_vm1 = vcmask (!%p139_p2), 130048  }
   0x6   : > { %142 = sbr.rel (%p139_p2) target bundleno = 491 (0x1eb), region = 32  ;;  %p163_p3 = scmp.lt.s32.totalorder (!%p139_p2), %s666_s14, 15  ;;  %762 = vmatprep.mubr.msk.f32.mxu0 (!%p139_p2), %vm198_vm0, %v174_v0  ;;  %v392_v1 = vld [vmem:[%s1012_s1] sm:$0xff] (!%p139_p2)  ;;  %v175_v16 = vld [vmem:[%s1011_s0 + $0x8] sm:$0xff] (!%p139_p2)  ;;  %v177_v18 = vld [vmem:[%s1011_s0 + $0x18] sm:$0xff] (!%p139_p2)  ;;  %vm588_vm2 = vcmask (!%p139_p2), 261120  }
   0x7   : > { %v830_v3 = vpack.c.bf16 (!%p139_p2), %v393_v2, %v392_v1  ;;  %v178_v19 = vld [vmem:[%s1011_s0 + $0x20] sm:$0xff] (!%p139_p2)  ;;  %v179_v20 = vld [vmem:[%s1011_s0 + $0x28] sm:$0xff] (!%p139_p2)  ;;  %v180_v21 = vld [vmem:[%s1011_s0 + $0x30] sm:$0xff] (!%p139_p2)  ;;  %s668_s30 = sshll.u32 (!%p139_p2), %s661_s13, 4 }
   0x8   : > { %v181_v22 = vld [vmem:[%s1011_s0 + $0x38] sm:$0xff] (!%p139_p2)  ;;  %v182_v23 = vld [vmem:[%s1011_s0 + $0x40] sm:$0xff] (!%p139_p2)  ;;  %v183_v24 = vld [vmem:[%s1011_s0 + $0x48] sm:$0xff] (!%p139_p2)  ;;  %p169_p4 = scmp.lt.s32.totalorder (!%p139_p2), %s668_s30, 31 }
   0x9   : > { %831 = vmatprep.subr.bf16.mxu1 (!%p139_p2), %v830_v3  ;;  %v184_v25 = vld [vmem:[%s1011_s0 + $0x50] sm:$0xff] (!%p139_p2)  ;;  %v185_v26 = vld [vmem:[%s1011_s0 + $0x58] sm:$0xff] (!%p139_p2)  ;;  %v186_v27 = vld [vmem:[%s1011_s0 + $0x60] sm:$0xff] (!%p139_p2) }
   0xa   : > { %833 = vmatpush3.bf16.msra.mxu1 (!%p139_p2), %v830_v3  ;;  %v187_v28 = vld [vmem:[%s1011_s0 + $0x68] sm:$0xff] (!%p139_p2)  ;;  %v188_v29 = vld [vmem:[%s1011_s0 + $0x70] sm:$0xff] (!%p139_p2)  ;;  %v189_v30 = vld [vmem:[%s1011_s0 + $0x78] sm:$0xff] (!%p139_p2) }
   0xd   : > { %s1016_s14 = smov (!%p163_p3, %s666_s14), 15  ;;  %s1018_s30 = smov (!%p169_p4, %s668_s30), 31 }
   0xe   : > { %s667_s17 = sshll.u32 %s1016_s14, 3  ;;  %s669_s4 = sshll.u32 %s1018_s30, 3 }
   0xf   : > { %s166_s24 = scalar_lea.vmem %s1013_s2, %s667_s17  ;;  %s974_s7 = scalar_lea.vmem %s1014_s3, %s669_s4 }
  0x10   : > { %v190_v4 = vld [vmem:[%s166_s24] sm:$0xff]  ;;  %v191_v5 = vld [vmem:[%s166_s24 + $0x8] sm:$0xff]  ;;  %v192_v6 = vld [vmem:[%s166_s24 + $0x10] sm:$0xff] }
  0x11   : > { %v814_v7 = vpack.c.bf16 %v191_v5, %v190_v4  ;;  %v193_v8 = vld [vmem:[%s166_s24 + $0x18] sm:$0xff]  ;;  %v194_v10 = vld [vmem:[%s166_s24 + $0x20] sm:$0xff]  ;;  %v195_v11 = vld [vmem:[%s166_s24 + $0x28] sm:$0xff] }
  0x12   : > { %v818_v9 = vpack.c.bf16 %v193_v8, %v192_v6  ;;  %v822_v12 = vpack.c.bf16 %v195_v11, %v194_v10  ;;  %v196_v13 = vld [vmem:[%s166_s24 + $0x30] sm:$0xff]  ;;  %v197_v14 = vld [vmem:[%s166_s24 + $0x38] sm:$0xff] }
  0x13   : > { %815 = vmatprep.subr.bf16.mxu0 %v814_v7  ;;  %v826_v15 = vpack.c.bf16 %v197_v14, %v196_v13 }
  0x14   : > { %817 = vmatpush3.bf16.msra.mxu0 %v814_v7 }
  0x15   : > { %819 = vmatprep.subr.bf16.mxu0 %v818_v9 }
  0x18   : > { %821 = vmatpush3.bf16.msra.mxu0 %v818_v9 }
  0x19   : > { %823 = vmatprep.subr.bf16.mxu0 %v822_v12 }
  0x1c   : > { %825 = vmatpush3.bf16.msra.mxu0 %v822_v12 }
  0x1d   : > { %827 = vmatprep.subr.bf16.mxu0 %v826_v15 }
  0x20   : > { %829 = vmatpush3.bf16.msra.mxu0 %v826_v15 }
  0x23   : > { %763 = vmatmul.mubr.msk.f32.vlgmr.msra.gmra.mrb[0].mxu0 %vm198_vm0, %v175_v16 }
  0x24   : > { %765 = vmatprep.mubr.msk.f32.mxu0 %vm198_vm0, %v176_v17 }
  0x27   : > { %766 = vmatmul.mubr.msk.f32.gmra.mrb[2].mxu0 %vm198_vm0, %v177_v18 }
  0x28   : > { %768 = vmatprep.mubr.msk.f32.mxu0 %vm198_vm0, %v178_v19 }
  0x2b   : > { %769 = vmatmul.mubr.msk.f32.gmra.mrb[4].mxu0 %vm198_vm0, %v179_v20 }
  0x2c   : > { %771 = vmatprep.mubr.msk.f32.mxu0 %vm198_vm0, %v180_v21 }
  0x2f   : > { %772 = vmatmul.mubr.msk.f32.gmra.mrb[6].mxu0 %vm198_vm0, %v181_v22 }
  0x30   : > { %774 = vmatprep.mubr.msk.f32.mxu0 %vm198_vm0, %v182_v23 }
  0x33   : > { %775 = vmatmul.mubr.msk.f32.gmra.mrb[8].mxu0 %vm198_vm0, %v183_v24 }
  0x34   : > { %777 = vmatprep.mubr.msk.f32.mxu0 %vm198_vm0, %v184_v25 }
  0x37   : > { %778 = vmatmul.mubr.msk.f32.gmra.mrb[10].mxu0 %vm198_vm0, %v185_v26 }
  0x38   : > { %780 = vmatprep.mubr.msk.f32.mxu0 %vm198_vm0, %v186_v27 }
  0x3b   : > { %781 = vmatmul.mubr.msk.f32.gmra.mrb[12].mxu0 %vm198_vm0, %v187_v28 }
  0x3c   : > { %783 = vmatprep.mubr.msk.f32.mxu0 %vm198_vm0, %v188_v29 }
  0x3f   : > { %784 = vmatmul.mubr.msk.f32.gmra.mrb[14].mxu0 %vm198_vm0, %v189_v30 }
  0xf6   : > { %v764_v31 = vpop.f32.mrb[0].mxu0 }
  0xf7   : > { %v313_v32 = vpop.f32.mrb[1].mxu0 }
  0xf8   : > { %790 = vmatprep.mubr.msk.f32.mxu1 %vm394_vm1, %v313_v32 }
  0xf9   : > { %791 = vmatmul.mubr.msk.f32.vlgmr.msra.gmra.mrb[0].mxu1 %vm394_vm1, %v764_v31 }
  0xfa   : > { %v767_v33 = vpop.f32.mrb[2].mxu0 }
  0xfb   : > { %v323_v34 = vpop.f32.mrb[3].mxu0 }
  0xfc   : > { %793 = vmatprep.mubr.msk.f32.mxu1 %vm394_vm1, %v323_v34 }
  0xfd   : > { %794 = vmatmul.mubr.msk.f32.gmra.mrb[2].mxu1 %vm394_vm1, %v767_v33 }
  0xfe   : > { %v770_v35 = vpop.f32.mrb[4].mxu0 }
  0xff   : > { %v333_v36 = vpop.f32.mrb[5].mxu0 }
 0x100   : > { %796 = vmatprep.mubr.msk.f32.mxu1 %vm394_vm1, %v333_v36 }
 0x101   : > { %797 = vmatmul.mubr.msk.f32.gmra.mrb[4].mxu1 %vm394_vm1, %v770_v35 }
 0x102   : > { %v773_v37 = vpop.f32.mrb[6].mxu0 }
 0x103   : > { %v343_v38 = vpop.f32.mrb[7].mxu0 }
 0x104   : > { %799 = vmatprep.mubr.msk.f32.mxu1 %vm394_vm1, %v343_v38 }
 0x105   : > { %800 = vmatmul.mubr.msk.f32.gmra.mrb[6].mxu1 %vm394_vm1, %v773_v37 }
 0x106   : > { %v776_v39 = vpop.f32.mrb[8].mxu0 }
 0x107   : > { %v353_v40 = vpop.f32.mrb[9].mxu0 }
 0x108   : > { %802 = vmatprep.mubr.msk.f32.mxu1 %vm394_vm1, %v353_v40 }
 0x109   : > { %803 = vmatmul.mubr.msk.f32.gmra.mrb[8].mxu1 %vm394_vm1, %v776_v39 }
 0x10a   : > { %v779_v41 = vpop.f32.mrb[10].mxu0 }
 0x10b   : > { %v363_v42 = vpop.f32.mrb[11].mxu0 }
 0x10c   : > { %805 = vmatprep.mubr.msk.f32.mxu1 %vm394_vm1, %v363_v42 }
 0x10d   : > { %806 = vmatmul.mubr.msk.f32.gmra.mrb[10].mxu1 %vm394_vm1, %v779_v41 }
 0x10e   : > { %v782_v43 = vpop.f32.mrb[12].mxu0 }
 0x10f   : > { %v373_v44 = vpop.f32.mrb[13].mxu0 }
 0x110   : > { %808 = vmatprep.mubr.msk.f32.mxu1 %vm394_vm1, %v373_v44 }
 0x111   : > { %809 = vmatmul.mubr.msk.f32.gmra.mrb[12].mxu1 %vm394_vm1, %v782_v43 }
 0x112   : > { %v785_v45 = vpop.f32.mrb[14].mxu0 }
 0x113   : > { %v383_v46 = vpop.f32.mrb[15].mxu0 }
 0x114   : > { %811 = vmatprep.mubr.msk.f32.mxu1 %vm394_vm1, %v383_v46 }
 0x115   : > { %812 = vmatmul.mubr.msk.f32.gmra.mrb[14].mxu1 %vm394_vm1, %v785_v45 }
 0x1cc   : > { %v792_v47 = vpop.f32.mrb[0].mxu1 }
 0x1cd   : > { %590 = vst.msk [vmem:[%s974_s7 + $0x8] sm:$0xff] %vm588_vm2, %v792_v47  ;;  %v509_v48 = vpop.f32.mrb[1].mxu1 }
 0x1ce   : > { %589 = vst.msk [vmem:[%s974_s7] sm:$0xff] %vm588_vm2, %v509_v48 }
 0x1d0   : > { %v795_v49 = vpop.f32.mrb[2].mxu1 }
 0x1d1   : > { %592 = vst.msk [vmem:[%s974_s7 + $0x18] sm:$0xff] %vm588_vm2, %v795_v49  ;;  %v519_v50 = vpop.f32.mrb[3].mxu1 }
 0x1d2   : > { %591 = vst.msk [vmem:[%s974_s7 + $0x10] sm:$0xff] %vm588_vm2, %v519_v50 }
 0x1d4   : > { %v798_v51 = vpop.f32.mrb[4].mxu1 }
 0x1d5   : > { %594 = vst.msk [vmem:[%s974_s7 + $0x28] sm:$0xff] %vm588_vm2, %v798_v51  ;;  %v529_v52 = vpop.f32.mrb[5].mxu1 }
 0x1d6   : > { %593 = vst.msk [vmem:[%s974_s7 + $0x20] sm:$0xff] %vm588_vm2, %v529_v52 }
 0x1d8   : > { %v801_v53 = vpop.f32.mrb[6].mxu1 }
 0x1d9   : > { %596 = vst.msk [vmem:[%s974_s7 + $0x38] sm:$0xff] %vm588_vm2, %v801_v53  ;;  %v539_v54 = vpop.f32.mrb[7].mxu1 }
 0x1da   : > { %595 = vst.msk [vmem:[%s974_s7 + $0x30] sm:$0xff] %vm588_vm2, %v539_v54 }
 0x1dc   : > { %v804_v55 = vpop.f32.mrb[8].mxu1 }
 0x1dd   : > { %598 = vst.msk [vmem:[%s974_s7 + $0x48] sm:$0xff] %vm588_vm2, %v804_v55  ;;  %v549_v56 = vpop.f32.mrb[9].mxu1 }
 0x1de   : > { %597 = vst.msk [vmem:[%s974_s7 + $0x40] sm:$0xff] %vm588_vm2, %v549_v56 }
 0x1e0   : > { %v807_v57 = vpop.f32.mrb[10].mxu1 }
 0x1e1   : > { %600 = vst.msk [vmem:[%s974_s7 + $0x58] sm:$0xff] %vm588_vm2, %v807_v57  ;;  %v559_v58 = vpop.f32.mrb[11].mxu1 }
 0x1e2   : > { %599 = vst.msk [vmem:[%s974_s7 + $0x50] sm:$0xff] %vm588_vm2, %v559_v58 }
 0x1e4   : > { %v810_v59 = vpop.f32.mrb[12].mxu1 }
 0x1e5   : > { %602 = vst.msk [vmem:[%s974_s7 + $0x68] sm:$0xff] %vm588_vm2, %v810_v59  ;;  %v569_v60 = vpop.f32.mrb[13].mxu1 }
 0x1e6   : > { %601 = vst.msk [vmem:[%s974_s7 + $0x60] sm:$0xff] %vm588_vm2, %v569_v60 }
 0x1e8   : > { %v813_v61 = vpop.f32.mrb[14].mxu1 }
 0x1e9   : > { %604 = vst.msk [vmem:[%s974_s7 + $0x78] sm:$0xff] %vm588_vm2, %v813_v61  ;;  %v579_v62 = vpop.f32.mrb[15].mxu1 }
 0x1ea   : > { %603 = vst.msk [vmem:[%s974_s7 + $0x70] sm:$0xff] %vm588_vm2, %v579_v62 }
 0x1eb PF: > { %s13_s12 = sadd.s32 1, %s848_s12  }
 0x1ec   : > { %p10_p5 = scmp.ge.s32.totalorder %s13_s12, 4  }
 0x1ee   :  { %12 = sbr.rel (!%p10_p5) target bundleno = 1 (0x1), region = 62 }

</bundles_post_ra>
